<compile_context>
chip_gen: v7x
topology: tpu7x:2x2x1
jax: 0.10.0
libtpu: 0.0.40
codegen_flags: <defaults>
</compile_context>

<pallas_src>
import jax
import jax.numpy as jnp
from jax.experimental import pallas as pl
from jax.experimental.pallas import tpu as pltpu


def _approx_posterior_kernel(
    enc_src_ref,   # (tS, B, 2H) f32  tile of encoded_src
    enc_trg_ref,   # (tS, B, 2H) f32  tile of encoded_trg
    w1_ref,        # (4H, L)     f32  linear.weight.T, pre-scaled by 1/S
    b1_ref,        # (1, L)      f32
    w2_ref,        # (L, 2L)     f32  [mu_w.T | var_w.T] fused
    b2_ref,        # (1, 2L)     f32  [mu_b   | var_b  ] fused
    out_ref,       # (B, 2L)     f32  out: [mu | log_var]
    acc_src_ref,   # (B, 2H)     f32  VMEM scratch (running sum over seq)
    acc_trg_ref,   # (B, 2H)     f32  VMEM scratch (running sum over seq)
):
    s = pl.program_id(0)

    @pl.when(s == 0)
    def _init():
        acc_src_ref[...] = jnp.zeros_like(acc_src_ref)
        acc_trg_ref[...] = jnp.zeros_like(acc_trg_ref)

    # Running sum over this sequence tile (the mean's 1/S is folded into w1).
    acc_src_ref[...] += jnp.sum(enc_src_ref[...], axis=0)
    acc_trg_ref[...] += jnp.sum(enc_trg_ref[...], axis=0)

    # TODO(synk): dropout implemented as identity (eval mode); training-mode
    # masking would use pltpu.prng_seed / pltpu.prng_random_bits.

    @pl.when(s == pl.num_programs(0) - 1)
    def _finalize():
        # Lane concat (2H + 2H = 4H = 128 lanes) -> single K=4H MXU pass.
        pooled = jnp.concatenate([acc_src_ref[...], acc_trg_ref[...]], axis=-1)
        h_z = jnp.tanh(
            jnp.dot(pooled, w1_ref[...], preferred_element_type=jnp.float32)
            + b1_ref[...]
        )
        # Fused mu / log_var projection: one MXU pass, one (B, 2L) store.
        out_ref[...] = (
            jnp.dot(h_z, w2_ref[...], preferred_element_type=jnp.float32)
            + b2_ref[...]
        )


def prepare_params(params, seq_len):
    """One-time parameter prep: transpose / fuse / 1-over-S-scale the weights.

    Call once per (parameters, seq_len); the per-call forward does no weight
    reshuffling.
    """
    w1 = jnp.asarray(params["linear_w"], jnp.float32)    # (L, 4H)  (out, in)
    b1 = jnp.asarray(params["linear_b"], jnp.float32)    # (L,)
    wmu = jnp.asarray(params["mu_w"], jnp.float32)       # (L, L)
    bmu = jnp.asarray(params["mu_b"], jnp.float32)       # (L,)
    wvar = jnp.asarray(params["var_w"], jnp.float32)     # (L, L)
    bvar = jnp.asarray(params["var_b"], jnp.float32)     # (L,)
    L = w1.shape[0]
    return {
        "w1": w1.T / float(seq_len),                      # (4H, L), folds 1/S
        "b1": b1.reshape(1, L),
        "w2": jnp.concatenate([wmu.T, wvar.T], axis=1),   # (L, 2L)
        "b2": jnp.concatenate([bmu, bvar]).reshape(1, 2 * L),
        "seq_len": int(seq_len),
    }


def _pick_seq_tile(S, B, H2, budget_bytes=2 * 1024 * 1024):
    """Largest divisor of S whose (tS, B, 2H) f32 tile fits the per-buffer
    budget (2 inputs x 2 pipeline buffers stays well under scoped VMEM on
    v5e/v6e/v7x)."""
    max_rows = max(1, budget_bytes // max(1, B * H2 * 4))
    t = 1
    for d in range(1, S + 1):
        if S % d == 0 and d <= max_rows:
            t = d
    return t


def approximate_posterior_forward(src, encoded_src, trg, encoded_trg, prepped):
    """Pallas implementation of ApproximatePosterior.forward (eval mode).

    src / trg are unused by the reference forward (kept for signature
    fidelity).  encoded_src / encoded_trg: (S, B, 2*hidden) float.
    Returns (mu, log_var), each (B, latent) float32.
    """
    del src, trg
    S, B, H2 = encoded_src.shape
    assert encoded_trg.shape == (S, B, H2)
    assert prepped["seq_len"] == S, "params were prepared for a different seq_len"
    H4, L = prepped["w1"].shape
    assert H4 == 2 * H2

    tS = _pick_seq_tile(S, B, H2)
    grid = (S // tS,)

    seq_spec = pl.BlockSpec((tS, B, H2), lambda s: (s, 0, 0))

    def full(shape):
        return pl.BlockSpec(shape, lambda s, _n=len(shape): (0,) * _n)

    out = pl.pallas_call(
        _approx_posterior_kernel,
        out_shape=jax.ShapeDtypeStruct((B, 2 * L), jnp.float32),
        grid_spec=pltpu.PrefetchScalarGridSpec(
            num_scalar_prefetch=0,
            grid=grid,
            in_specs=[
                seq_spec,                 # encoded_src tiles
                seq_spec,                 # encoded_trg tiles
                full((H4, L)),            # w1 (resident: constant block index)
                full((1, L)),             # b1
                full((L, 2 * L)),         # w2
                full((1, 2 * L)),         # b2
            ],
            out_specs=full((B, 2 * L)),
            scratch_shapes=[
                pltpu.VMEM((B, H2), jnp.float32),   # acc_src
                pltpu.VMEM((B, H2), jnp.float32),   # acc_trg
            ],
        ),
        compiler_params=pltpu.CompilerParams(
            dimension_semantics=("arbitrary",),
            vmem_limit_bytes=32 * 1024 * 1024,
        ),
    )(
        encoded_src.astype(jnp.float32),
        encoded_trg.astype(jnp.float32),
        prepped["w1"],
        prepped["b1"],
        prepped["w2"],
        prepped["b2"],
    )
    return out[:, :L], out[:, L:]


def _init_params(key, hidden_size, latent_size):
    """Deterministic synthetic init matching nn.Linear parameter shapes."""
    ks = jax.random.split(key, 6)

    def u(k, shape, fan_in):
        bound = 1.0 / jnp.sqrt(fan_in)
        return jax.random.uniform(k, shape, jnp.float32, -bound, bound)

    return {
        "linear_w": u(ks[0], (latent_size, 4 * hidden_size), 4 * hidden_size),
        "linear_b": u(ks[1], (latent_size,), 4 * hidden_size),
        "mu_w":     u(ks[2], (latent_size, latent_size), latent_size),
        "mu_b":     u(ks[3], (latent_size,), latent_size),
        "var_w":    u(ks[4], (latent_size, latent_size), latent_size),
        "var_b":    u(ks[5], (latent_size,), latent_size),
    }


if __name__ == "__main__":
    hidden_size = 32
    latent_size = 32
    batch = 2
    seq = 8

    key = jax.random.PRNGKey(0)
    k_src, k_esrc, k_trg, k_etrg, k_par = jax.random.split(key, 5)

    # src / trg: token-id-like placeholders (unused by forward).
    src = jax.random.randint(k_src, (seq, batch), 0, 100)
    trg = jax.random.randint(k_trg, (seq, batch), 0, 100)
    # encoder outputs: (seq, batch, 2*hidden) as from a bidirectional RNN.
    encoded_src = jax.random.normal(k_esrc, (seq, batch, 2 * hidden_size), jnp.float32)
    encoded_trg = jax.random.normal(k_etrg, (seq, batch, 2 * hidden_size), jnp.float32)

    params = _init_params(k_par, hidden_size, latent_size)
    prepped = prepare_params(params, seq)     # one-time weight prep

    mu, log_var = approximate_posterior_forward(
        src, encoded_src, trg, encoded_trg, prepped)
    jax.block_until_ready((mu, log_var))

    # Pure-JAX reference check (eval-mode dropout == identity).
    h_src = jnp.mean(encoded_src, axis=0)
    h_trg = jnp.mean(encoded_trg, axis=0)
    h_z = jnp.tanh(
        jnp.concatenate([h_src, h_trg], axis=1) @ params["linear_w"].T
        + params["linear_b"])
    mu_ref = h_z @ params["mu_w"].T + params["mu_b"]
    lv_ref = h_z @ params["var_w"].T + params["var_b"]
    assert jnp.allclose(mu, mu_ref, atol=1e-5), "mu mismatch"
    assert jnp.allclose(log_var, lv_ref, atol=1e-5), "log_var mismatch"

    print("KERNEL_OK")
</pallas_src>

<mosaic_0001>
module attributes {stable_mosaic.version = 11 : i64} {
  func.func @_approx_posterior_kernel(%arg0: i32, %arg1: memref<8x2x64xf32, #tpu.memory_space<vmem>>, %arg2: memref<8x2x64xf32, #tpu.memory_space<vmem>>, %arg3: memref<128x32xf32, #tpu.memory_space<vmem>>, %arg4: memref<1x32xf32, #tpu.memory_space<vmem>>, %arg5: memref<32x64xf32, #tpu.memory_space<vmem>>, %arg6: memref<1x64xf32, #tpu.memory_space<vmem>>, %arg7: memref<2x64xf32, #tpu.memory_space<vmem>>, %arg8: memref<2x64xf32, #tpu.memory_space<vmem>>, %arg9: memref<2x64xf32, #tpu.memory_space<vmem>>) attributes {dimension_semantics = [#tpu.dimension_semantics<arbitrary>], iteration_bounds = array<i64: 1>, scalar_prefetch = 0 : i64, scratch_operands = 2 : i64, tpu.core_type = #tpu.core_type<tc>, window_params = [{transform_indices = @transform_0, window_bounds = array<i64: 8, 2, 64>}, {transform_indices = @transform_1, window_bounds = array<i64: 8, 2, 64>}, {pipeline_mode = #tpu.pipeline_mode<synchronous>, transform_indices = @transform_2, window_bounds = array<i64: 128, 32>}, {pipeline_mode = #tpu.pipeline_mode<synchronous>, transform_indices = @transform_3, window_bounds = array<i64: 1, 32>}, {pipeline_mode = #tpu.pipeline_mode<synchronous>, transform_indices = @transform_4, window_bounds = array<i64: 32, 64>}, {pipeline_mode = #tpu.pipeline_mode<synchronous>, transform_indices = @transform_5, window_bounds = array<i64: 1, 64>}, {pipeline_mode = #tpu.pipeline_mode<synchronous>, transform_indices = @transform_6, window_bounds = array<i64: 2, 64>}]} {
    %c0_i32 = arith.constant 0 : i32
    %0 = arith.cmpi eq, %arg0, %c0_i32 : i32
    %1 = arith.extui %0 : i1 to i32
    %c0_i32_0 = arith.constant 0 : i32
    %2 = arith.cmpi ne, %1, %c0_i32_0 : i32
    scf.if %2 {
      %cst_17 = arith.constant 0.000000e+00 : f32
      %16 = vector.broadcast %cst_17 : f32 to vector<2x64xf32>
      %c0_18 = arith.constant 0 : index
      %c0_19 = arith.constant 0 : index
      %17 = vector.load %arg8[%c0_18, %c0_19] : memref<2x64xf32, #tpu.memory_space<vmem>>, vector<2x64xf32>
      tpu.vector_store %arg8[%c0_18, %c0_19], %16 {strides = array<i32>} : memref<2x64xf32, #tpu.memory_space<vmem>>, vector<2x64xf32>,
      %cst_20 = arith.constant 0.000000e+00 : f32
      %18 = vector.broadcast %cst_20 : f32 to vector<2x64xf32>
      %c0_21 = arith.constant 0 : index
      %c0_22 = arith.constant 0 : index
      %19 = vector.load %arg9[%c0_21, %c0_22] : memref<2x64xf32, #tpu.memory_space<vmem>>, vector<2x64xf32>
      tpu.vector_store %arg9[%c0_21, %c0_22], %18 {strides = array<i32>} : memref<2x64xf32, #tpu.memory_space<vmem>>, vector<2x64xf32>,
    } else {
    }
    %c0 = arith.constant 0 : index
    %c0_1 = arith.constant 0 : index
    %3 = vector.load %arg8[%c0, %c0_1] : memref<2x64xf32, #tpu.memory_space<vmem>>, vector<2x64xf32>
    %c0_2 = arith.constant 0 : index
    %c0_3 = arith.constant 0 : index
    %c0_4 = arith.constant 0 : index
    %4 = vector.load %arg1[%c0_2, %c0_3, %c0_4] : memref<8x2x64xf32, #tpu.memory_space<vmem>>, vector<8x2x64xf32>
    %cst = arith.constant dense<0.000000e+00> : vector<2x64xf32>
    %5 = vector.multi_reduction <add>, %4, %cst [0] : vector<8x2x64xf32> to vector<2x64xf32>
    %6 = arith.addf %3, %5 : vector<2x64xf32>
    %c0_5 = arith.constant 0 : index
    %c0_6 = arith.constant 0 : index
    %7 = vector.load %arg8[%c0_5, %c0_6] : memref<2x64xf32, #tpu.memory_space<vmem>>, vector<2x64xf32>
    tpu.vector_store %arg8[%c0_5, %c0_6], %6 {strides = array<i32>} : memref<2x64xf32, #tpu.memory_space<vmem>>, vector<2x64xf32>,
    %c0_7 = arith.constant 0 : index
    %c0_8 = arith.constant 0 : index
    %8 = vector.load %arg9[%c0_7, %c0_8] : memref<2x64xf32, #tpu.memory_space<vmem>>, vector<2x64xf32>
    %c0_9 = arith.constant 0 : index
    %c0_10 = arith.constant 0 : index
    %c0_11 = arith.constant 0 : index
    %9 = vector.load %arg2[%c0_9, %c0_10, %c0_11] : memref<8x2x64xf32, #tpu.memory_space<vmem>>, vector<8x2x64xf32>
    %cst_12 = arith.constant dense<0.000000e+00> : vector<2x64xf32>
    %10 = vector.multi_reduction <add>, %9, %cst_12 [0] : vector<8x2x64xf32> to vector<2x64xf32>
    %11 = arith.addf %8, %10 : vector<2x64xf32>
    %c0_13 = arith.constant 0 : index
    %c0_14 = arith.constant 0 : index
    %12 = vector.load %arg9[%c0_13, %c0_14] : memref<2x64xf32, #tpu.memory_space<vmem>>, vector<2x64xf32>
    tpu.vector_store %arg9[%c0_13, %c0_14], %11 {strides = array<i32>} : memref<2x64xf32, #tpu.memory_space<vmem>>, vector<2x64xf32>,
    %c0_i32_15 = arith.constant 0 : i32
    %13 = arith.cmpi eq, %arg0, %c0_i32_15 : i32
    %14 = arith.extui %13 : i1 to i32
    %c0_i32_16 = arith.constant 0 : i32
    %15 = arith.cmpi ne, %14, %c0_i32_16 : i32
    scf.if %15 {
      %c0_17 = arith.constant 0 : index
      %c0_18 = arith.constant 0 : index
      %16 = vector.load %arg8[%c0_17, %c0_18] : memref<2x64xf32, #tpu.memory_space<vmem>>, vector<2x64xf32>
      %c0_19 = arith.constant 0 : index
      %c0_20 = arith.constant 0 : index
      %17 = vector.load %arg9[%c0_19, %c0_20] : memref<2x64xf32, #tpu.memory_space<vmem>>, vector<2x64xf32>
      %18 = tpu.concatenate %16, %17 in 1 : vector<2x64xf32>, vector<2x64xf32> -> vector<2x128xf32>
      %c0_21 = arith.constant 0 : index
      %c0_22 = arith.constant 0 : index
      %19 = vector.load %arg3[%c0_21, %c0_22] : memref<128x32xf32, #tpu.memory_space<vmem>>, vector<128x32xf32>
      %cst_23 = arith.constant dense<0.000000e+00> : vector<2x32xf32>
      %20 = tpu.matmul %18, %19, %cst_23 {dimension_numbers = #tpu.dot_dimension_numbers<[1], [0], [0], [1], [0, 0, 1, 1], [], []>} : vector<2x128xf32>, vector<128x32xf32>, vector<2x32xf32> -> vector<2x32xf32>
      %c0_24 = arith.constant 0 : index
      %c0_25 = arith.constant 0 : index
      %21 = vector.load %arg4[%c0_24, %c0_25] : memref<1x32xf32, #tpu.memory_space<vmem>>, vector<1x32xf32>
      %22 = vector.broadcast %21 : vector<1x32xf32> to vector<2x32xf32>
      %23 = arith.addf %20, %22 : vector<2x32xf32>
      %24 = math.tanh %23 : vector<2x32xf32>
      %c0_26 = arith.constant 0 : index
      %c0_27 = arith.constant 0 : index
      %25 = vector.load %arg5[%c0_26, %c0_27] : memref<32x64xf32, #tpu.memory_space<vmem>>, vector<32x64xf32>
      %cst_28 = arith.constant dense<0.000000e+00> : vector<2x64xf32>
      %26 = tpu.matmul %24, %25, %cst_28 {dimension_numbers = #tpu.dot_dimension_numbers<[1], [0], [0], [1], [0, 0, 1, 1], [], []>} : vector<2x32xf32>, vector<32x64xf32>, vector<2x64xf32> -> vector<2x64xf32>
      %c0_29 = arith.constant 0 : index
      %c0_30 = arith.constant 0 : index
      %27 = vector.load %arg6[%c0_29, %c0_30] : memref<1x64xf32, #tpu.memory_space<vmem>>, vector<1x64xf32>
      %28 = vector.broadcast %27 : vector<1x64xf32> to vector<2x64xf32>
      %29 = arith.addf %26, %28 : vector<2x64xf32>
      %c0_31 = arith.constant 0 : index
      %c0_32 = arith.constant 0 : index
      %30 = vector.load %arg7[%c0_31, %c0_32] : memref<2x64xf32, #tpu.memory_space<vmem>>, vector<2x64xf32>
      tpu.vector_store %arg7[%c0_31, %c0_32], %29 {strides = array<i32>} : memref<2x64xf32, #tpu.memory_space<vmem>>, vector<2x64xf32>,
    } else {
    }
    return
  }
  func.func @transform_0(%arg0: i32) -> (i32, i32, i32) {
    %c0_i32 = arith.constant 0 : i32
    %c0_i32_0 = arith.constant 0 : i32
    %c0_i32_1 = arith.constant 0 : i32
    return %arg0, %c0_i32, %c0_i32_0 : i32, i32, i32
  }
  func.func @transform_1(%arg0: i32) -> (i32, i32, i32) {
    %c0_i32 = arith.constant 0 : i32
    %c0_i32_0 = arith.constant 0 : i32
    %c0_i32_1 = arith.constant 0 : i32
    return %arg0, %c0_i32, %c0_i32_0 : i32, i32, i32
  }
  func.func @transform_2(%arg0: i32) -> (i32, i32) {
    %c0_i32 = arith.constant 0 : i32
    %c0_i32_0 = arith.constant 0 : i32
    %c0_i32_1 = arith.constant 0 : i32
    return %c0_i32, %c0_i32_0 : i32, i32
  }
  func.func @transform_3(%arg0: i32) -> (i32, i32) {
    %c0_i32 = arith.constant 0 : i32
    %c0_i32_0 = arith.constant 0 : i32
    %c0_i32_1 = arith.constant 0 : i32
    return %c0_i32, %c0_i32_0 : i32, i32
  }
  func.func @transform_4(%arg0: i32) -> (i32, i32) {
    %c0_i32 = arith.constant 0 : i32
    %c0_i32_0 = arith.constant 0 : i32
    %c0_i32_1 = arith.constant 0 : i32
    return %c0_i32, %c0_i32_0 : i32, i32
  }
  func.func @transform_5(%arg0: i32) -> (i32, i32) {
    %c0_i32 = arith.constant 0 : i32
    %c0_i32_0 = arith.constant 0 : i32
    %c0_i32_1 = arith.constant 0 : i32
    return %c0_i32, %c0_i32_0 : i32, i32
  }
  func.func @transform_6(%arg0: i32) -> (i32, i32) {
    %c0_i32 = arith.constant 0 : i32
    %c0_i32_0 = arith.constant 0 : i32
    %c0_i32_1 = arith.constant 0 : i32
    return %c0_i32, %c0_i32_0 : i32, i32
  }
}

</mosaic_0001>

<bundles_post_ra>
// kernel: tpu_custom_call.1
= control target key start
LH: loop header
LB: loop body
LE: loop exit
PB: predicated region body
PF: predicated region fallthrough
CT: control target
= control target key end

     0   :  { %vm28_vm0 = vcmask 517120   ;;  %v421_v2 = vmov 0.0   ;;  %v422_v18 = vmov 0.0|0.0   ;;  %s622_s0 = inlined_call_operand.vmem [shape: f32[8,2,64], index: 0, kind: input, shape index: {}]   ;;  %s623_s1 = inlined_call_operand.vmem [shape: f32[8,2,64], index: 1, kind: input, shape index: {}]   ;;  %s624_s2 = inlined_call_operand.vmem [shape: f32[128,32], index: 2, kind: input, shape index: {}]   ;;  %s625_s3 = inlined_call_operand.vmem [shape: f32[1,32], index: 3, kind: input, shape index: {}]   ;;  %s626_s4 = inlined_call_operand.vmem [shape: f32[32,64], index: 4, kind: input, shape index: {}]   ;;  %s627_s5 = inlined_call_operand.vmem [shape: f32[1,64], index: 5, kind: input, shape index: {}]   ;;  %s628_s6 = inlined_call_operand.hbm [shape: f32[2,64], index: 6, kind: output, shape index: {}]  }
   0x1   :  { %v59_v0 = vld [vmem:[%s623_s1] sm:$0x3]  ;;  %v60_v1 = vld [vmem:[%s623_s1 + $0x2] sm:$0x3]  ;;  %30 = vst.msk [vmem:[#allocation3] sm:$0x3] %vm28_vm0, %v421_v2  ;;  %360 = vmatprep.subr.bf16.mxu0 %v422_v18  ;;  %384 = vmatprep.subr.bf16.mxu1 %v422_v18 }
   0x2   :  { %v61_v3 = vld [vmem:[%s623_s1 + $0x4] sm:$0x3]  ;;  %29 = vst.msk [vmem:[#allocation2] sm:$0x3] %vm28_vm0, %v421_v2  ;;  %v62_v4 = vld [vmem:[%s623_s1 + $0x6] sm:$0x3] }
   0x3   :  { %v63_v5 = vld [vmem:[%s623_s1 + $0x8] sm:$0x3]  ;;  %v67_v6 = vsel %vm28_vm0, %v59_v0, 0.0  ;;  %v68_v7 = vsel %vm28_vm0, %v60_v1, 0.0  ;;  %v70_v8 = vsel %vm28_vm0, %v61_v3, 0.0  ;;  %v95_v9 = vld [vmem:[%s624_s2] sm:$0xff] }
   0x4   :  { %v69_v10 = vadd.f32 %v68_v7, %v67_v6  ;;  %v96_v11 = vld [vmem:[%s624_s2 + $0x8] sm:$0xff]  ;;  %v97_v12 = vld [vmem:[%s624_s2 + $0x10] sm:$0xff]  ;;  %v98_v13 = vld [vmem:[%s624_s2 + $0x18] sm:$0xff]  ;;  %v72_v14 = vsel %vm28_vm0, %v62_v4, 0.0  ;;  %v74_v19 = vsel %vm28_vm0, %v63_v5, 0.0 }
   0x5   :  { %v361_v15 = vpack.c.bf16 %v96_v11, %v95_v9  ;;  %v64_v16 = vld [vmem:[%s623_s1 + $0xa] sm:$0x3]  ;;  %v364_v20 = vpack.c.bf16 %v98_v13, %v97_v12  ;;  %v65_v21 = vld [vmem:[%s623_s1 + $0xc] sm:$0x3]  ;;  %v99_v23 = vld [vmem:[%s624_s2 + $0x20] sm:$0xff] }
   0x6   :  { %v71_v17 = vadd.f32 %v70_v8, %v69_v10  ;;  %v100_v24 = vld [vmem:[%s624_s2 + $0x28] sm:$0xff]  ;;  %v76_v25 = vsel %vm28_vm0, %v64_v16, 0.0  ;;  %v32_v26 = vld [vmem:[%s622_s0] sm:$0x3]  ;;  %v33_v29 = vld [vmem:[%s622_s0 + $0x2] sm:$0x3] }
   0x7   :  { %362 = vmatpush3.bf16.msra.mxu0 %v361_v15  ;;  %v66_v27 = vld [vmem:[%s623_s1 + $0xe] sm:$0x3]  ;;  %v34_v30 = vld [vmem:[%s622_s0 + $0x4] sm:$0x3]  ;;  %v78_v31 = vsel %vm28_vm0, %v65_v21, 0.0  ;;  %v367_v32 = vpack.c.bf16 %v100_v24, %v99_v23  ;;  %v101_v35 = vld [vmem:[%s624_s2 + $0x30] sm:$0xff] }
   0x8   :  { %v73_v22 = vadd.f32 %v72_v14, %v71_v17  ;;  %363 = vmatprep.subr.bf16.mxu0 %v422_v18  ;;  %v35_v33 = vld [vmem:[%s622_s0 + $0x6] sm:$0x3]  ;;  %v102_v36 = vld [vmem:[%s624_s2 + $0x38] sm:$0xff]  ;;  %v41_v37 = vsel %vm28_vm0, %v32_v26, 0.0  ;;  %v42_v38 = vsel %vm28_vm0, %v33_v29, 0.0  ;;  %v44_v39 = vsel %vm28_vm0, %v34_v30, 0.0 }
   0x9   :  { %v80_v40 = vsel %vm28_vm0, %v66_v27, 0.0  ;;  %v36_v41 = vld [vmem:[%s622_s0 + $0x8] sm:$0x3]  ;;  %v43_v42 = vadd.f32 %v42_v38, %v41_v37 }
   0xa   :  { %v75_v28 = vadd.f32 %v74_v19, %v73_v22 }
   0xb   :  { %365 = vmatpush3.bf16.msra.mxu0 %v364_v20 }
   0xc   :  { %v77_v34 = vadd.f32 %v76_v25, %v75_v28  ;;  %366 = vmatprep.subr.bf16.mxu0 %v422_v18 }
   0xd   :  { %11 = vsyncpa [#allocation5], 0  ;;  %v46_v44 = vsel %vm28_vm0, %v35_v33, 0.0  ;;  %v58_v45 = vld [vmem:[#allocation3] sm:$0x3]  ;;  %v370_v46 = vpack.c.bf16 %v102_v36, %v101_v35  ;;  %vm423_vm1 = vmmov 0   ;;  %v45_v48 = vadd.f32 %v44_v39, %v43_v42 }
   0xe   :  { %v79_v43 = vadd.f32 %v78_v31, %v77_v34  ;;  %346 = vmatprep.mubr.msk.f32.mxu0 %vm423_vm1, %v421_v2  ;;  %v37_v47 = vld [vmem:[%s622_s0 + $0xa] sm:$0x3]  ;;  %v103_v50 = vld [vmem:[%s624_s2 + $0x40] sm:$0xff]  ;;  %v48_v52 = vsel %vm28_vm0, %v36_v41, 0.0  ;;  %357 = vmatprep.mubr.msk.f32.mxu1 %vm423_vm1, %v421_v2  ;;  %v38_v53 = vld [vmem:[%s622_s0 + $0xc] sm:$0x3] }
   0xf   :  { %368 = vmatpush3.bf16.msra.mxu0 %v367_v32  ;;  %v104_v51 = vld [vmem:[%s624_s2 + $0x48] sm:$0xff]  ;;  %v47_v54 = vadd.f32 %v46_v44, %v45_v48  ;;  %v50_v56 = vsel %vm28_vm0, %v37_v47, 0.0  ;;  %v105_v60 = vld [vmem:[%s624_s2 + $0x50] sm:$0xff]  ;;  %v106_v61 = vld [vmem:[%s624_s2 + $0x58] sm:$0xff]  ;;  %v52_v62 = vsel %vm28_vm0, %v38_v53, 0.0  ;;  %s424_s7 = smov 64  }
  0x10   :  { %v81_v49 = vadd.f32 %v80_v40, %v79_v43  ;;  %369 = vmatprep.subr.bf16.mxu0 %v422_v18  ;;  %v373_v57 = vpack.c.bf16 %v104_v51, %v103_v50  ;;  %v39_v58 = vld [vmem:[%s622_s0 + $0xe] sm:$0x3]  ;;  %v376_v1 = vpack.c.bf16 %v106_v61, %v105_v60  ;;  %v107_v3 = vld [vmem:[%s624_s2 + $0x60] sm:$0xff]  ;;  %v109_v10 = vld [vmem:[%s624_s2 + $0x70] sm:$0xff]  ;;  %vm93_vm2 = vcmask 523264  }
  0x11   :  { %v49_v59 = vadd.f32 %v48_v52, %v47_v54  ;;  %v54_v0 = vsel %vm28_vm0, %v39_v58, 0.0  ;;  %v108_v4 = vld [vmem:[%s624_s2 + $0x68] sm:$0xff]  ;;  %v31_v5 = vld [vmem:[#allocation2] sm:$0x3]  ;;  %v110_v11 = vld [vmem:[%s624_s2 + $0x78] sm:$0xff]  ;;  %vm200_vm3 = vcmask 261120  }
  0x12   :  { %v82_v55 = vadd.f32 %v81_v49, %v58_v45  ;;  %v379_v8 = vpack.c.bf16 %v108_v4, %v107_v3  ;;  %v382_v12 = vpack.c.bf16 %v110_v11, %v109_v10  ;;  %v189_v16 = vld [vmem:[%s626_s4] sm:$0xff]  ;;  %v190_v17 = vld [vmem:[%s626_s4 + $0x8] sm:$0xff]  ;;  %v191_v19 = vld [vmem:[%s626_s4 + $0x10] sm:$0xff] }
  0x13   :  { %371 = vmatpush3.bf16.msra.mxu0 %v370_v46  ;;  %v51_v63 = vadd.f32 %v50_v56, %v49_v59  ;;  %v385_v20 = vpack.c.bf16 %v190_v17, %v189_v16  ;;  %v192_v21 = vld [vmem:[%s626_s4 + $0x18] sm:$0xff]  ;;  %v289_v23 = vld [vmem:[%s625_s3] ss:$0 sm:$0xff]  ;;  %s425_s4 = smov [#allocation4]  }
  0x14   :  { %83 = vst.msk [vmem:[#allocation3] sm:$0x3] %vm28_vm0, %v82_v55  ;;  %372 = vmatprep.subr.bf16.mxu0 %v422_v18  ;;  %v388_v22 = vpack.c.bf16 %v192_v21, %v191_v19  ;;  %v290_v28 = vld [vmem:[%s627_s5] ss:$0 sm:$0xff]  ;;  %s281_s22 = sshll.u32 %s425_s4, 4  ;;  %s282_s22 = int_to_ptr.vmem [resolvable:$true] %s281_s22 }
  0x15   :  { %v53_v2 = vadd.f32 %v52_v62, %v51_v63  ;;  %386 = vmatpush3.bf16.msra.mxu1 %v385_v20  ;;  %s397_s3 = scalar_lea.vmem %s282_s22, 32  ;;  %p402_p1 = scmp.lt.s32.totalorder %s282_s22, %s282_s22 }
  0x16   :  { %387 = vmatprep.subr.bf16.mxu1 %v422_v18  ;;  %p398_p0 = scmp.ne.s32.totalorder %s282_s22, %s397_s3  ;;  %p403_p2 = scmp.lt.s32.totalorder %s397_s3, %s397_s3 }
  0x17   :  { %374 = vmatpush3.bf16.msra.mxu0 %v373_v57  ;;  %v55_v6 = vadd.f32 %v54_v0, %v53_v2 }
  0x18   :  { %375 = vmatprep.subr.bf16.mxu0 %v422_v18  ;;  %p404_p3 = por %p403_p2, %p402_p1 }
  0x19   :  { %v56_v9 = vadd.f32 %v55_v6, %v31_v5  ;;  %389 = vmatpush3.bf16.msra.mxu1 %v388_v22 }
  0x1a   :  { %p405_p4 = pnand %p404_p3, %p398_p0 }
  0x1b   :  { %v88_v7 = vld [vmem:[#allocation3] sm:$0x3]  ;;  %377 = vmatpush3.bf16.msra.mxu0 %v376_v1  ;;  %57 = vst.msk [vmem:[#allocation2] sm:$0x3] %vm28_vm0, %v56_v9 }
  0x1c   :  { %90 = vrot.lane.b32.xlu0 %v88_v7, %s424_s7  ;;  %378 = vmatprep.subr.bf16.mxu0 %v422_v18 }
  0x1f   :  { %380 = vmatpush3.bf16.msra.mxu0 %v379_v8 }
  0x20   :  { %381 = vmatprep.subr.bf16.mxu0 %v422_v18 }
  0x22   :  { %v87_v13 = vld [vmem:[#allocation2] sm:$0x3] }
  0x23   :  { %383 = vmatpush3.bf16.msra.mxu0 %v382_v12 }
  0x8e   :  { %v91_v14 = vpop.permute.xlu0 %90 }
  0x8f   :  { %v94_v15 = vsel %vm93_vm2, %v87_v13, %v91_v14 }
  0x90   :  { %347 = vmatmul.mubr.f32.vlgmr.msra.gmra.mrb[0].mxu0 %v94_v15 }
 0x163   :  { %v184_v24 = vpop.f32.mrb[0].mxu0 }
 0x164   :  { %v185_v25 = vadd.f32 %v289_v23, %v184_v24  ;;  %v348_v26 = vpop.f32.mrb[1].mxu0 }
 0x166   :  { %395 = vtanh.f32 %v185_v25 }
 0x170   :  { %v396_v27 = vpop.eup %395 }
 0x171   :  { %358 = vmatmul.mubr.msk.f32.vlgmr.msra.gmra.mrb[0].mxu1 %vm200_vm3, %v396_v27 }
 0x244   :  { %v270_v29 = vpop.f32.mrb[0].mxu1 }
 0x245   :  { %v271_v18 = vadd.f32 %v290_v28, %v270_v29  ;;  %v359_v30 = vpop.f32.mrb[1].mxu1 }
 0x247   :  { %274 = vst.msk [vmem:[#allocation4] sm:$0x3] %vm28_vm0, %v271_v18 }
 0x248   :  { %408 = shalt.err (!%p405_p4)
}
 0x249   :  { %s409_s25 = scalar_lea.hbm %s628_s6, 32 }
 0x24a   :  { %p410_p5 = scmp.ne.s32.totalorder %s628_s6, %s409_s25  ;;  %p413_p6 = scmp.lt.u32.totalorder %s409_s25, %s628_s6 }
 0x24c   :  { %p415_p7 = pnand %p413_p6, %p410_p5 }
 0x24e   :  { %418 = shalt.err (!%p415_p7)
}
 0x24f   :  { %284 = dma.vmem_to_hbm [thread:$0]  %s282_s22, 32, %s628_s6, [#allocation5]  }
 0x250   :  { %419 = dma.done.wait [#allocation5], 32  }
 0x251   :  { %420 = vsyncadd [#allocation5], 4294967264 }
 0x252   :  { %288 = vsyncpa [#allocation5], 1 }

</bundles_post_ra>
